<compile_context>
chip_gen: v6e
topology: v6e:2x2x1
jax: 0.10.0
libtpu: 0.0.40
codegen_flags: <defaults>
</compile_context>

<pallas_src>
import functools

import jax
import jax.numpy as jnp
from jax import lax
from jax.experimental import pallas as pl
from jax.experimental.pallas import tpu as pltpu

LANE = 128
SUBLANE = 8
BLOCK_ROWS = 2048          # (2048, 128) f32 = 1 MiB per streamed block


def _cdiv(a, b):
    return -(-a // b)


def _transform(x, mode):
    if mode == "identity":
        return x
    if mode == "relu_one_minus":      # relu(1 - x)
        return jnp.maximum(1.0 - x, 0.0)
    if mode == "relu_one_plus":       # relu(1 + x)
        return jnp.maximum(1.0 + x, 0.0)
    raise ValueError(mode)


def _block_mask(count, block_rows, blocks_per_split):
    """True for elements whose global flat index is < count in this block.

    Note: int32 flat indices limit masked tensors to < 2**31 elements, which
    is far beyond any realistic critic output.
    """
    block_idx = pl.program_id(0) * blocks_per_split + pl.program_id(1)
    row0 = block_idx * block_rows
    r_ids = lax.broadcasted_iota(jnp.int32, (block_rows, LANE), 0)
    c_ids = lax.broadcasted_iota(jnp.int32, (block_rows, LANE), 1)
    flat_idx = (row0 + r_ids) * LANE + c_ids
    return flat_idx < count


def _sum_kernel(x_ref, o_ref, acc_ref, *, mode, count, block_rows,
                blocks_per_split, needs_mask):
    """Accumulate sum(f(x)) into an (8,128) vector accumulator per split."""
    j = pl.program_id(1)

    @pl.when(j == 0)
    def _():
        acc_ref[...] = jnp.zeros_like(acc_ref)

    v = _transform(x_ref[...], mode)
    if needs_mask:
        v = jnp.where(_block_mask(count, block_rows, blocks_per_split), v, 0.0)
    acc_ref[...] += v.reshape(-1, SUBLANE, LANE).sum(axis=0)   # VPU-only adds

    @pl.when(j == pl.num_programs(1) - 1)
    def _():
        o_ref[...] = acc_ref[...]


def _fused_d_kernel(real_ref, fake_ref, o_real_ref, o_fake_ref,
                    acc_real, acc_fake, *, count, block_rows,
                    blocks_per_split, needs_mask):
    """One grid, two streams: sum(relu(1-real)) and sum(relu(1+fake))."""
    j = pl.program_id(1)

    @pl.when(j == 0)
    def _():
        acc_real[...] = jnp.zeros_like(acc_real)
        acc_fake[...] = jnp.zeros_like(acc_fake)

    vr = jnp.maximum(1.0 - real_ref[...], 0.0)
    vf = jnp.maximum(1.0 + fake_ref[...], 0.0)
    if needs_mask:
        mask = _block_mask(count, block_rows, blocks_per_split)
        vr = jnp.where(mask, vr, 0.0)
        vf = jnp.where(mask, vf, 0.0)
    acc_real[...] += vr.reshape(-1, SUBLANE, LANE).sum(axis=0)
    acc_fake[...] += vf.reshape(-1, SUBLANE, LANE).sum(axis=0)

    @pl.when(j == pl.num_programs(1) - 1)
    def _():
        o_real_ref[...] = acc_real[...]
        o_fake_ref[...] = acc_fake[...]


# ----------------------------- wrappers -------------------------------------

def _prep(x):
    """Flatten to a lane-dense [rows, 128] f32 slab (no copy when aligned)."""
    total = int(x.size)
    flat = jnp.ravel(x).astype(jnp.float32)
    chunk = SUBLANE * LANE
    padded = _cdiv(total, chunk) * chunk
    if padded != total:
        # Rare fallback (size not a multiple of 8*128); pad value is
        # irrelevant because the kernel masks against the true count.
        flat = jnp.pad(flat, (0, padded - total))
    rows = padded // LANE                 # always a multiple of SUBLANE
    x2d = flat.reshape(rows, LANE)
    block_rows = min(BLOCK_ROWS, rows)
    n_blocks = _cdiv(rows, block_rows)
    return x2d, total, padded, rows, block_rows, n_blocks


def _grid_params(n_blocks):
    splits = 2 if n_blocks >= 2 else 1    # both TCs on v7x; harmless elsewhere
    bps = _cdiv(n_blocks, splits)
    return splits, bps


def _needs_mask(total, padded, rows, block_rows, n_blocks, splits, bps):
    # Mask only when (a) the flat size is not 8*128-aligned, (b) the last
    # block is partial, or (c) the rectangular grid has an overflow block.
    return (padded != total) or (rows % block_rows != 0) or (splits * bps != n_blocks)


def _in_spec(block_rows, bps, n_blocks):
    def idx(s, j):
        # Clamp fully-out-of-range block indices (odd n_blocks split); their
        # contribution is zeroed by the in-kernel mask.
        return (jnp.minimum(s * bps + j, n_blocks - 1), 0)
    return pl.BlockSpec((block_rows, LANE), idx)


_OUT_SPEC = pl.BlockSpec((None, SUBLANE, LANE), lambda s, j: (s, 0, 0))


def _mean_single(x, mode):
    x2d, total, padded, rows, block_rows, n_blocks = _prep(x)
    splits, bps = _grid_params(n_blocks)
    mask = _needs_mask(total, padded, rows, block_rows, n_blocks, splits, bps)

    partial = pl.pallas_call(
        functools.partial(_sum_kernel, mode=mode, count=total,
                          block_rows=block_rows, blocks_per_split=bps,
                          needs_mask=mask),
        out_shape=jax.ShapeDtypeStruct((splits, SUBLANE, LANE), jnp.float32),
        grid_spec=pltpu.PrefetchScalarGridSpec(
            num_scalar_prefetch=0,
            grid=(splits, bps),
            in_specs=[_in_spec(block_rows, bps, n_blocks)],
            out_specs=_OUT_SPEC,
            scratch_shapes=[pltpu.VMEM((SUBLANE, LANE), jnp.float32)],
        ),
        compiler_params=pltpu.CompilerParams(
            dimension_semantics=("parallel", "arbitrary")),
    )(x2d)

    return jnp.sum(partial) / float(total)


def forward_G(D_fake):
    # -mean(D_fake)
    return -_mean_single(D_fake, "identity")


def forward_D(D_fake, D_real):
    if int(D_fake.size) != int(D_real.size):
        # Different element counts -> no shared grid; two separate reductions.
        return (_mean_single(D_real, "relu_one_minus"),
                _mean_single(D_fake, "relu_one_plus"))

    real2d, total, padded, rows, block_rows, n_blocks = _prep(D_real)
    fake2d, _, _, _, _, _ = _prep(D_fake)
    splits, bps = _grid_params(n_blocks)
    mask = _needs_mask(total, padded, rows, block_rows, n_blocks, splits, bps)
    in_spec = _in_spec(block_rows, bps, n_blocks)

    real_sum, fake_sum = pl.pallas_call(
        functools.partial(_fused_d_kernel, count=total, block_rows=block_rows,
                          blocks_per_split=bps, needs_mask=mask),
        out_shape=(jax.ShapeDtypeStruct((splits, SUBLANE, LANE), jnp.float32),
                   jax.ShapeDtypeStruct((splits, SUBLANE, LANE), jnp.float32)),
        grid_spec=pltpu.PrefetchScalarGridSpec(
            num_scalar_prefetch=0,
            grid=(splits, bps),
            in_specs=[in_spec, in_spec],
            out_specs=(_OUT_SPEC, _OUT_SPEC),
            scratch_shapes=[pltpu.VMEM((SUBLANE, LANE), jnp.float32),
                            pltpu.VMEM((SUBLANE, LANE), jnp.float32)],
        ),
        compiler_params=pltpu.CompilerParams(
            dimension_semantics=("parallel", "arbitrary")),
    )(real2d, fake2d)

    inv = 1.0 / float(total)
    return jnp.sum(real_sum) * inv, jnp.sum(fake_sum) * inv


def wdist_loss(D_fake, D_real=None):
    if D_real is None:
        return forward_G(D_fake)
    return forward_D(D_fake, D_real)


if __name__ == "__main__":
    key = jax.random.PRNGKey(0)
    k_fake, k_real, k_odd, k_big = jax.random.split(key, 4)

    # PatchGAN-style critic outputs, NCHW.
    D_fake = jax.random.normal(k_fake, (2, 4, 16, 16), dtype=jnp.float32)
    D_real = jax.random.normal(k_real, (2, 4, 16, 16), dtype=jnp.float32)

    g_loss = wdist_loss(D_fake)
    d_loss_real, d_loss_fake = wdist_loss(D_fake, D_real)
    jax.block_until_ready((g_loss, d_loss_real, d_loss_fake))

    ref_g = -jnp.mean(D_fake)
    ref_real = jnp.mean(jnp.maximum(1.0 - D_real, 0.0))
    ref_fake = jnp.mean(jnp.maximum(1.0 + D_fake, 0.0))
    assert jnp.allclose(g_loss, ref_g, atol=1e-5, rtol=1e-5)
    assert jnp.allclose(d_loss_real, ref_real, atol=1e-5, rtol=1e-5)
    assert jnp.allclose(d_loss_fake, ref_fake, atol=1e-5, rtol=1e-5)

    # (a) size not a multiple of 8*128 exercises the in-kernel tail mask.
    x_odd = jax.random.normal(k_odd, (3, 5, 7, 11), dtype=jnp.float32)
    assert jnp.allclose(wdist_loss(x_odd), -jnp.mean(x_odd),
                        atol=1e-5, rtol=1e-5)

    # (b) larger tensor: multi-block streaming, 2-way "parallel" split with an
    #     overflow block (n_blocks odd), and a partial (masked) last block in
    #     the fused D path.
    x_big_f = jax.random.normal(k_big, (2, 8, 320, 320), dtype=jnp.float32)
    x_big_r = -x_big_f
    br, bf = wdist_loss(x_big_f, x_big_r)
    assert jnp.allclose(br, jnp.mean(jnp.maximum(1.0 - x_big_r, 0.0)),
                        atol=1e-4, rtol=1e-4)
    assert jnp.allclose(bf, jnp.mean(jnp.maximum(1.0 + x_big_f, 0.0)),
                        atol=1e-4, rtol=1e-4)
    assert jnp.allclose(wdist_loss(x_big_f), -jnp.mean(x_big_f),
                        atol=1e-4, rtol=1e-4)

    jax.block_until_ready((br, bf))
    print("KERNEL_OK")
</pallas_src>

<mosaic_0001>
module attributes {stable_mosaic.version = 11 : i64} {
  func.func @_sum_kernel(%arg0: i32, %arg1: i32, %arg2: memref<16x128xf32, #tpu.memory_space<vmem>>, %arg3: memref<1x8x128xf32, #tpu.memory_space<vmem>>, %arg4: memref<8x128xf32, #tpu.memory_space<vmem>>) attributes {dimension_semantics = [#tpu.dimension_semantics<parallel>, #tpu.dimension_semantics<arbitrary>], iteration_bounds = array<i64: 1, 1>, scalar_prefetch = 0 : i64, scratch_operands = 1 : i64, tpu.core_type = #tpu.core_type<tc>, window_params = [{transform_indices = @transform_0, window_bounds = array<i64: 16, 128>}, {transform_indices = @transform_1, window_bounds = array<i64: 1, 8, 128>}]} {
    %c0_i32 = arith.constant 0 : i32
    %0 = arith.cmpi eq, %arg1, %c0_i32 : i32
    %1 = arith.extui %0 : i1 to i32
    %c0_i32_0 = arith.constant 0 : i32
    %2 = arith.cmpi ne, %1, %c0_i32_0 : i32
    scf.if %2 {
      %cst_8 = arith.constant 0.000000e+00 : f32
      %12 = vector.broadcast %cst_8 : f32 to vector<8x128xf32>
      %c0_9 = arith.constant 0 : index
      %c0_10 = arith.constant 0 : index
      %13 = vector.load %arg4[%c0_9, %c0_10] : memref<8x128xf32, #tpu.memory_space<vmem>>, vector<8x128xf32>
      tpu.vector_store %arg4[%c0_9, %c0_10], %12 {strides = array<i32>} : memref<8x128xf32, #tpu.memory_space<vmem>>, vector<8x128xf32>,
    } else {
    }
    %c0 = arith.constant 0 : index
    %c0_1 = arith.constant 0 : index
    %3 = vector.load %arg2[%c0, %c0_1] : memref<16x128xf32, #tpu.memory_space<vmem>>, vector<16x128xf32>
    %c0_2 = arith.constant 0 : index
    %c0_3 = arith.constant 0 : index
    %4 = vector.load %arg4[%c0_2, %c0_3] : memref<8x128xf32, #tpu.memory_space<vmem>>, vector<8x128xf32>
    %5 = vector.shape_cast %3 : vector<16x128xf32> to vector<2x8x128xf32>
    %cst = arith.constant dense<0.000000e+00> : vector<8x128xf32>
    %6 = vector.multi_reduction <add>, %5, %cst [0] : vector<2x8x128xf32> to vector<8x128xf32>
    %7 = arith.addf %4, %6 : vector<8x128xf32>
    %c0_4 = arith.constant 0 : index
    %c0_5 = arith.constant 0 : index
    %8 = vector.load %arg4[%c0_4, %c0_5] : memref<8x128xf32, #tpu.memory_space<vmem>>, vector<8x128xf32>
    tpu.vector_store %arg4[%c0_4, %c0_5], %7 {strides = array<i32>} : memref<8x128xf32, #tpu.memory_space<vmem>>, vector<8x128xf32>,
    %c0_i32_6 = arith.constant 0 : i32
    %9 = arith.cmpi eq, %arg1, %c0_i32_6 : i32
    %10 = arith.extui %9 : i1 to i32
    %c0_i32_7 = arith.constant 0 : i32
    %11 = arith.cmpi ne, %10, %c0_i32_7 : i32
    scf.if %11 {
      %c0_8 = arith.constant 0 : index
      %c0_9 = arith.constant 0 : index
      %12 = vector.load %arg4[%c0_8, %c0_9] : memref<8x128xf32, #tpu.memory_space<vmem>>, vector<8x128xf32>
      %c0_10 = arith.constant 0 : index
      %c0_11 = arith.constant 0 : index
      %c0_12 = arith.constant 0 : index
      %13 = vector.load %arg3[%c0_10, %c0_11, %c0_12] : memref<1x8x128xf32, #tpu.memory_space<vmem>>, vector<1x8x128xf32>
      %14 = vector.shape_cast %13 : vector<1x8x128xf32> to vector<8x128xf32>
      %15 = vector.shape_cast %12 : vector<8x128xf32> to vector<1x8x128xf32>
      tpu.vector_store %arg3[%c0_10, %c0_11, %c0_12], %15 {strides = array<i32>} : memref<1x8x128xf32, #tpu.memory_space<vmem>>, vector<1x8x128xf32>,
    } else {
    }
    return
  }
  func.func @transform_0(%arg0: i32, %arg1: i32) -> (i32, i32) {
    %c1_i32 = arith.constant 1 : i32
    %0 = arith.muli %arg0, %c1_i32 : i32
    %1 = arith.addi %0, %arg1 : i32
    %c0_i32 = arith.constant 0 : i32
    %2 = arith.minsi %1, %c0_i32 : i32
    %c0_i32_0 = arith.constant 0 : i32
    %c0_i32_1 = arith.constant 0 : i32
    return %2, %c0_i32_0 : i32, i32
  }
  func.func @transform_1(%arg0: i32, %arg1: i32) -> (i32, i32, i32) {
    %c0_i32 = arith.constant 0 : i32
    %c0_i32_0 = arith.constant 0 : i32
    %c0_i32_1 = arith.constant 0 : i32
    return %arg0, %c0_i32, %c0_i32_0 : i32, i32, i32
  }
}

</mosaic_0001>

<bundles_post_ra>
// kernel: tpu_custom_call.1
= control target key start
LH: loop header
LB: loop body
LE: loop exit
PB: predicated region body
PF: predicated region fallthrough
CT: control target
= control target key end

     0   :  { %6 = vsyncpa [#allocation4], 0  ;;  %s134_s0 = inlined_call_operand.hbm [shape: f32[16,128], index: 0, kind: input, shape index: {}]   ;;  %s135_s1 = inlined_call_operand.hbm [shape: f32[1,8,128], index: 1, kind: output, shape index: {}]  }
   0x1   :  { %7 = vsyncpa [#allocation5], 0  ;;  %s114_s6 = smov [#allocation3]  }
   0x2   :  { %s19_s7 = sshll.u32 %s114_s6, 4  ;;  %s20_s7 = int_to_ptr.vmem [resolvable:$true] %s19_s7 }
   0x3   :  { %s78_s8 = scalar_lea.vmem %s20_s7, 256  ;;  %p83_p1 = scmp.lt.s32.totalorder %s20_s7, %s20_s7 }
   0x4   :  { %p79_p0 = scmp.ne.s32.totalorder %s20_s7, %s78_s8  ;;  %p84_p2 = scmp.lt.s32.totalorder %s78_s8, %s78_s8 }
   0x6   :  { %p85_p3 = por %p84_p2, %p83_p1 }
   0x8   :  { %p86_p4 = pnand %p85_p3, %p79_p0 }
   0xa   :  { %89 = shalt.err (!%p86_p4)
}
   0xb   :  { %s115_s9 = smov 128   ;;  %s116_s10 = smov 8  }
   0xc   :  { %25 = dma.hbm_to_vmem [thread:$0]  %s134_s0, 256, %s20_s7, [#allocation4], %s115_s9, %s115_s9, %s116_s10  }
   0xd   :  { %110 = dma.done.wait [#allocation4], 256  }
   0xe   :  { %111 = vsyncadd [#allocation4], 4294967040  ;;  %s117_s13 = smov [#allocation6]   ;;  %v38_v0 = vld [vmem:[#allocation3] sm:$0xff]  ;;  %v39_v1 = vld [vmem:[#allocation3 + $0x8] sm:$0xff] }
   0xf   :  { %s55_s14 = sshll.u32 %s117_s13, 4  ;;  %v41_v2 = vadd.f32 %v39_v1, %v38_v0  ;;  %s56_s14 = int_to_ptr.vmem [resolvable:$true] %s55_s14 }
  0x10   :  { %s90_s15 = scalar_lea.vmem %s56_s14, 128  ;;  %p95_p6 = scmp.lt.s32.totalorder %s56_s14, %s56_s14 }
  0x11   :  { %48 = vst [vmem:[#allocation6] sm:$0xff] %v41_v2  ;;  %p91_p5 = scmp.ne.s32.totalorder %s56_s14, %s90_s15  ;;  %p96_p7 = scmp.lt.s32.totalorder %s90_s15, %s90_s15 }
  0x13   :  { %p97_p8 = por %p96_p7, %p95_p6 }
  0x15   :  { %p98_p9 = pnand %p97_p8, %p91_p5 }
  0x17   :  { %101 = shalt.err (!%p98_p9)
}
  0x18   :  { %58 = dma.vmem_to_hbm [thread:$0]  %s56_s14, 128, %s135_s1, [#allocation5]  }
  0x19   :  { %112 = dma.done.wait [#allocation5], 128  }
  0x1a   :  { %113 = vsyncadd [#allocation5], 4294967168 }
  0x1b   :  { %62 = vsyncpa [#allocation4], 1 }
  0x1c   :  { %63 = vsyncpa [#allocation5], 1 }

</bundles_post_ra>
